<compile_context>
chip_gen: v7x
topology: tpu7x:2x2x1
jax: 0.10.0
libtpu: 0.0.40
codegen_flags: <defaults>
</compile_context>

<pallas_src>
import jax
import jax.numpy as jnp
from jax.experimental import pallas as pl
from jax.experimental.pallas import tpu as pltpu


# ---------------------------------------------------------------------------
# Kernel
# ---------------------------------------------------------------------------
def seq2seq_kernel(x_ref, y_ref, wenc_ref, benc_ref, whid_ref, wdec_ref,
                   wout_ref, bout_ref, out_ref,
                   enc_out_sc, enc_hid_sc, dsc_sc):
    """Grid = (batch_block, t_tile, v_tile); v innermost.

    x_ref      (Bb, S, E)  bf16   -- depends on batch block only
    y_ref      (Bb, Tt, E) bf16   -- depends on (batch block, t tile)
    wout_ref   (H, TV)     bf16   -- depends on v tile (double-buffered)
    out_ref    (Bb, Tt, TV)
    enc_out_sc (Bb, S, H)  bf16   scratch (per batch block)
    enc_hid_sc (Bb, H)     f32    scratch (per batch block)
    dsc_sc     (Bb, Tt, H) bf16   scratch (per (batch block, t tile))
    """
    f32 = jnp.float32
    bf16 = jnp.bfloat16
    t = pl.program_id(1)
    v = pl.program_id(2)

    Bb, S, E = x_ref.shape
    Tt = y_ref.shape[1]
    H = wenc_ref.shape[1]
    TV = wout_ref.shape[1]

    # ---- encoder: computed once per batch block, cached in VMEM scratch ----
    @pl.when(jnp.logical_and(t == 0, v == 0))
    def _encode():
        x = x_ref[...].reshape(Bb * S, E)                      # bf16
        enc_f32 = jnp.tanh(
            jnp.dot(x, wenc_ref[...], preferred_element_type=f32)
            + benc_ref[...])                                   # (Bb*S, H) f32
        enc3 = enc_f32.reshape(Bb, S, H)
        enc_out_sc[...] = enc3.astype(bf16)                    # hoisted cast
        # mean-pool in f32 (exact 1/S), then hidden projection on the MXU
        pooled = jnp.sum(enc3, axis=1) * f32(1.0 / S)          # (Bb, H) f32
        enc_hid_sc[...] = jnp.dot(pooled.astype(bf16), whid_ref[...],
                                  preferred_element_type=f32)  # (Bb, H) f32

    # ---- decoder state + attention: once per T tile, reused for all V tiles
    @pl.when(v == 0)
    def _decode_state():
        y = y_ref[...].reshape(Bb * Tt, E)                     # bf16
        dec_in = jnp.dot(y, wdec_ref[...],
                         preferred_element_type=f32).reshape(Bb, Tt, H)
        dec_state = jnp.tanh(dec_in + enc_hid_sc[...][:, None, :])  # f32
        ds_bf = dec_state.astype(bf16)                         # hoisted cast
        enc_bf = enc_out_sc[...]                               # already bf16

        # attention: contract last dims -> no XLU transpose of enc_out
        # TODO(synk): for S >= 512 restructure as an online-softmax over S
        # tiles (running max / denom) to bound live vregs and overlap EUP/MXU.
        scores = jnp.einsum('bth,bsh->bts', ds_bf, enc_bf,
                            preferred_element_type=f32)        # (Bb, Tt, S)
        scores = scores - jnp.max(scores, axis=-1, keepdims=True)
        p = jnp.exp(scores)
        attn = p * pl.reciprocal(jnp.sum(p, axis=-1, keepdims=True),
                                 approx=True)                  # EUP slot
        context = jnp.einsum('bts,bsh->bth', attn.astype(bf16), enc_bf,
                             preferred_element_type=f32)       # (Bb, Tt, H)
        dsc_sc[...] = (dec_state + context).astype(bf16)       # hoisted cast

    # ---- output projection: every (t, v) tile -- the streamed/tiled part ----
    logits = jnp.dot(dsc_sc[...].reshape(Bb * Tt, H), wout_ref[...],
                     preferred_element_type=f32) + bout_ref[...]   # (Bb*Tt, TV)
    out_ref[...] = logits.reshape(Bb, Tt, TV).astype(out_ref.dtype)


# ---------------------------------------------------------------------------
# Wrapper
# ---------------------------------------------------------------------------
def prepare_params(params_f32):
    """bf16-at-rest copies of the MXU weight operands (cast once, not per call).
    Biases stay f32 (added to f32 accumulators)."""
    bf16, f32 = jnp.bfloat16, jnp.float32
    return {
        "w_enc": params_f32["w_enc"].astype(bf16),
        "w_hid": params_f32["w_hid"].astype(bf16),
        "w_dec": params_f32["w_dec"].astype(bf16),
        "w_out": params_f32["w_out"].astype(bf16),
        "b_enc": params_f32["b_enc"].reshape(1, -1).astype(f32),
        "b_out": params_f32["b_out"].reshape(1, -1).astype(f32),
    }


def base_model_forward(x_emb, y_emb, params, *, t_tile=None, v_tile=128,
                       num_batch_blocks=1, out_dtype=jnp.float32,
                       vmem_limit_bytes=48 * 1024 * 1024):
    """Fused encoder->decoder forward.

    x_emb (B,S,E), y_emb (B,T,E): bf16-at-rest embeddings.
    params: output of prepare_params (bf16 weights, f32 biases).
    t_tile / v_tile: decoder-length / vocab tile sizes (v_tile multiple of 128).
    out_dtype: pass jnp.bfloat16 to halve logits HBM writeback at large V.
    """
    bf16, f32 = jnp.bfloat16, jnp.float32
    x_emb = x_emb.astype(bf16)
    y_emb = y_emb.astype(bf16)

    B, S, E = x_emb.shape
    _, T, _ = y_emb.shape
    w_enc = params["w_enc"].astype(bf16)
    w_hid = params["w_hid"].astype(bf16)
    w_dec = params["w_dec"].astype(bf16)
    w_out = params["w_out"].astype(bf16)
    b_enc = params["b_enc"].reshape(1, -1).astype(f32)
    b_out = params["b_out"].reshape(1, -1).astype(f32)
    H = w_enc.shape[1]
    V = w_out.shape[1]

    # --- batch blocking (only truly independent axis -> "parallel") ---
    nb = num_batch_blocks
    assert B % nb == 0, "batch must divide evenly into batch blocks"
    Bb = B // nb

    # --- T tiling ---
    Tt = T if t_tile is None else min(t_tile, T)
    assert T % Tt == 0 and (Tt == T or Tt % 8 == 0), \
        "t_tile must divide T and be a multiple of 8 (or equal T)"
    nt = T // Tt

    # --- V tiling (lane-dense) ---
    Vp = pl.cdiv(V, 128) * 128
    if Vp != V:
        # pad columns are exact zeros; wrapper slices back to V below.
        w_out = jnp.zeros((H, Vp), bf16).at[:, :V].set(w_out)
        b_out = jnp.zeros((1, Vp), f32).at[:, :V].set(b_out)
    TV = min(v_tile, Vp)
    assert TV % 128 == 0 and Vp % TV == 0, \
        "v_tile must be a multiple of 128 that divides the padded vocab"
    nv = Vp // TV

    # Cost hint so XLA schedules the surrounding gathers sanely.
    out_bytes = B * T * Vp * jnp.dtype(out_dtype).itemsize
    flops = (2 * B * S * E * H          # encoder projection
             + 2 * B * H * H            # hidden projection
             + 2 * B * T * E * H        # decoder projection
             + 4 * B * T * S * H        # attention scores + context
             + 2 * B * T * H * Vp)      # output projection
    cost = pl.CostEstimate(
        flops=flops,
        transcendentals=B * (S * H + T * H + T * S + T),   # tanh + exp + recip
        bytes_accessed=((x_emb.size + y_emb.size) * 2
                        + (w_enc.size + w_hid.size + w_dec.size + w_out.size) * 2
                        + (b_enc.size + b_out.size) * 4
                        + out_bytes))

    const2 = lambda b, t, v: (0, 0)

    out_padded = pl.pallas_call(
        seq2seq_kernel,
        out_shape=jax.ShapeDtypeStruct((B, T, Vp), out_dtype),
        grid_spec=pltpu.PrefetchScalarGridSpec(
            num_scalar_prefetch=0,
            grid=(nb, nt, nv),                     # v innermost: w_out streams
            in_specs=[
                pl.BlockSpec((Bb, S, E), lambda b, t, v: (b, 0, 0)),   # x
                pl.BlockSpec((Bb, Tt, E), lambda b, t, v: (b, t, 0)),  # y
                pl.BlockSpec((E, H), const2),                          # w_enc
                pl.BlockSpec((1, H), const2),                          # b_enc
                pl.BlockSpec((H, H), const2),                          # w_hid
                pl.BlockSpec((E, H), const2),                          # w_dec
                pl.BlockSpec((H, TV), lambda b, t, v: (0, v),          # w_out
                             pipeline_mode=pl.Buffered(2)),
                pl.BlockSpec((1, TV), lambda b, t, v: (0, v)),         # b_out
            ],
            out_specs=pl.BlockSpec((Bb, Tt, TV), lambda b, t, v: (b, t, v)),
            scratch_shapes=[
                pltpu.VMEM((Bb, S, H), bf16),      # enc_out (per batch block)
                pltpu.VMEM((Bb, H), f32),          # enc_hidden
                pltpu.VMEM((Bb, Tt, H), bf16),     # dec_state + context
            ],
        ),
        compiler_params=pltpu.CompilerParams(
            # Only the batch axis is iteration-independent (scratch is carried
            # along t and v), so only it may be "parallel".
            # TODO(synk): on v7x, shard the V axis across the 2 TensorCores via
            # pl.core_map (recomputing dec_state+context per core) instead of
            # the batch axis, to halve per-core w_out DMA / residency.
            dimension_semantics=("parallel", "arbitrary", "arbitrary"),
            vmem_limit_bytes=vmem_limit_bytes,
        ),
        cost_estimate=cost,
    )(x_emb, y_emb, w_enc, b_enc, w_hid, w_dec, w_out, b_out)

    # No copy when V is already a multiple of 128 (recommended config).
    return out_padded if Vp == V else out_padded[..., :V]


# ---------------------------------------------------------------------------
# References
# ---------------------------------------------------------------------------
def reference_forward_mirrored(x_emb_bf, y_emb_bf, params_bf):
    """Pure-JAX reference mirroring the kernel's dtype flow (bf16 MXU operands,
    f32 accumulation, bf16 scratch round-trips) with an exact reciprocal."""
    f32, bf16 = jnp.float32, jnp.bfloat16
    B, S, E = x_emb_bf.shape
    T = y_emb_bf.shape[1]
    H = params_bf["w_enc"].shape[1]
    V = params_bf["w_out"].shape[1]
    b_enc = params_bf["b_enc"].reshape(1, -1).astype(f32)
    b_out = params_bf["b_out"].reshape(1, -1).astype(f32)

    enc_f32 = jnp.tanh(
        jnp.dot(x_emb_bf.astype(bf16).reshape(B * S, E), params_bf["w_enc"],
                preferred_element_type=f32) + b_enc).reshape(B, S, H)
    enc_bf = enc_f32.astype(bf16)
    pooled = jnp.sum(enc_f32, axis=1) * f32(1.0 / S)
    enc_hidden = jnp.dot(pooled.astype(bf16), params_bf["w_hid"],
                         preferred_element_type=f32)
    dec_in = jnp.dot(y_emb_bf.astype(bf16).reshape(B * T, E), params_bf["w_dec"],
                     preferred_element_type=f32).reshape(B, T, H)
    dec_state = jnp.tanh(dec_in + enc_hidden[:, None, :])
    ds_bf = dec_state.astype(bf16)
    scores = jnp.einsum('bth,bsh->bts', ds_bf, enc_bf,
                        preferred_element_type=f32)
    scores = scores - jnp.max(scores, axis=-1, keepdims=True)
    p = jnp.exp(scores)
    attn = p / jnp.sum(p, axis=-1, keepdims=True)
    context = jnp.einsum('bts,bsh->bth', attn.astype(bf16), enc_bf,
                         preferred_element_type=f32)
    dsc = (dec_state + context).astype(bf16)
    logits = jnp.dot(dsc.reshape(B * T, H), params_bf["w_out"],
                     preferred_element_type=f32) + b_out
    return logits.reshape(B, T, V)


def reference_forward_f32(x_emb, y_emb, params):
    """Full-f32 JAX reference of the original encoder->decoder forward."""
    enc_out = jnp.tanh(
        jnp.einsum("bse,eh->bsh", x_emb, params["w_enc"]) + params["b_enc"])
    enc_hidden = jnp.einsum("bh,hk->bk", jnp.mean(enc_out, axis=1),
                            params["w_hid"])
    dec_state = jnp.tanh(
        jnp.einsum("bte,eh->bth", y_emb, params["w_dec"])
        + enc_hidden[:, None, :])
    scores = jnp.einsum("bth,bsh->bts", dec_state, enc_out)
    attn = jax.nn.softmax(scores, axis=-1)
    context = jnp.einsum("bts,bsh->bth", attn, enc_out)
    return jnp.einsum("bth,hv->btv", dec_state + context,
                      params["w_out"]) + params["b_out"]


# ---------------------------------------------------------------------------
# Demo
# ---------------------------------------------------------------------------
if __name__ == "__main__":
    # Small shapes; V is a multiple of 128 (lane-dense, no post-slice copy) and
    # T/V are chosen so that the T and V grid axes are actually exercised.
    B, S, T = 2, 8, 16       # batch, source len, target len
    E, H, V = 32, 32, 256    # embed dim, hidden dim, vocab size

    key = jax.random.PRNGKey(0)
    keys = jax.random.split(key, 8)

    params_f32 = {
        "w_enc": jax.random.normal(keys[0], (E, H), jnp.float32) * (1.0 / jnp.sqrt(E)),
        "b_enc": jnp.zeros((1, H), jnp.float32),
        "w_hid": jax.random.normal(keys[1], (H, H), jnp.float32) * (1.0 / jnp.sqrt(H)),
        "w_dec": jax.random.normal(keys[2], (E, H), jnp.float32) * (1.0 / jnp.sqrt(E)),
        "w_out": jax.random.normal(keys[3], (H, V), jnp.float32) * (1.0 / jnp.sqrt(H)),
        "b_out": jnp.zeros((1, V), jnp.float32),
    }
    params_bf = prepare_params(params_f32)   # bf16-at-rest (one-time cast)

    # "batch": integer token ids; embedding table kept bf16-at-rest too.
    # TODO(synk): fuse the embedding gather into the kernel via scalar-prefetch
    # token ids in SMEM + pl.Element row indexing (avoids HBM activations).
    embed_f32 = jax.random.normal(keys[4], (V, E), jnp.float32) * 0.1
    embed_bf = embed_f32.astype(jnp.bfloat16)
    src_tokens = jax.random.randint(keys[5], (B, S), 0, V)
    tgt_tokens = jax.random.randint(keys[6], (B, T), 0, V)
    x_emb_bf = jnp.take(embed_bf, src_tokens, axis=0)    # (B, S, E) bf16
    y_emb_bf = jnp.take(embed_bf, tgt_tokens, axis=0)    # (B, T, E) bf16

    out = base_model_forward(x_emb_bf, y_emb_bf, params_bf,
                             t_tile=8, v_tile=128)        # grid (1, 2, 2)
    out = jax.block_until_ready(out)
    assert out.shape == (B, T, V)

    # tight check vs a reference mirroring the kernel's bf16/f32 numerics
    ref_mirror = reference_forward_mirrored(x_emb_bf, y_emb_bf, params_bf)
    assert jnp.allclose(out, ref_mirror, atol=5e-3, rtol=5e-3), \
        "mismatch vs mirrored (bf16-matmul) reference"

    # sanity check vs the full-f32 reference (bf16 operands + approx reciprocal
    # loosen the tolerance slightly, as expected)
    x_emb_f32 = jnp.take(embed_f32, src_tokens, axis=0)
    y_emb_f32 = jnp.take(embed_f32, tgt_tokens, axis=0)
    ref_f32 = reference_forward_f32(x_emb_f32, y_emb_f32, params_f32)
    assert jnp.allclose(out, ref_f32, atol=2e-2, rtol=2e-2), \
        "mismatch vs f32 reference"

    print("KERNEL_OK")
</pallas_src>

<mosaic_0001>
module attributes {stable_mosaic.version = 11 : i64} {
  func.func @seq2seq_kernel(%arg0: i32, %arg1: i32, %arg2: i32, %arg3: memref<2x8x32xbf16, #tpu.memory_space<vmem>>, %arg4: memref<2x8x32xbf16, #tpu.memory_space<vmem>>, %arg5: memref<32x32xbf16, #tpu.memory_space<vmem>>, %arg6: memref<1x32xf32, #tpu.memory_space<vmem>>, %arg7: memref<32x32xbf16, #tpu.memory_space<vmem>>, %arg8: memref<32x32xbf16, #tpu.memory_space<vmem>>, %arg9: memref<32x128xbf16, #tpu.memory_space<vmem>>, %arg10: memref<1x128xf32, #tpu.memory_space<vmem>>, %arg11: memref<2x8x128xf32, #tpu.memory_space<vmem>>, %arg12: memref<2x8x32xbf16, #tpu.memory_space<vmem>>, %arg13: memref<2x32xf32, #tpu.memory_space<vmem>>, %arg14: memref<2x8x32xbf16, #tpu.memory_space<vmem>>) attributes {dimension_semantics = [#tpu.dimension_semantics<parallel>, #tpu.dimension_semantics<arbitrary>, #tpu.dimension_semantics<arbitrary>], iteration_bounds = array<i64: 1, 2, 2>, scalar_prefetch = 0 : i64, scratch_operands = 3 : i64, tpu.core_type = #tpu.core_type<tc>, window_params = [{transform_indices = @transform_0, window_bounds = array<i64: 2, 8, 32>}, {transform_indices = @transform_1, window_bounds = array<i64: 2, 8, 32>}, {pipeline_mode = #tpu.pipeline_mode<synchronous>, transform_indices = @transform_2, window_bounds = array<i64: 32, 32>}, {pipeline_mode = #tpu.pipeline_mode<synchronous>, transform_indices = @transform_3, window_bounds = array<i64: 1, 32>}, {pipeline_mode = #tpu.pipeline_mode<synchronous>, transform_indices = @transform_4, window_bounds = array<i64: 32, 32>}, {pipeline_mode = #tpu.pipeline_mode<synchronous>, transform_indices = @transform_5, window_bounds = array<i64: 32, 32>}, {pipeline_mode = #tpu.pipeline_mode<double_buffered>, transform_indices = @transform_6, window_bounds = array<i64: 32, 128>}, {transform_indices = @transform_7, window_bounds = array<i64: 1, 128>}, {transform_indices = @transform_8, window_bounds = array<i64: 2, 8, 128>}]} {
    %c0_i32 = arith.constant 0 : i32
    %0 = arith.cmpi eq, %arg1, %c0_i32 : i32
    %c0_i32_0 = arith.constant 0 : i32
    %1 = arith.cmpi eq, %arg2, %c0_i32_0 : i32
    %2 = arith.andi %0, %1 : i1
    %3 = arith.extui %2 : i1 to i32
    %c0_i32_1 = arith.constant 0 : i32
    %4 = arith.cmpi ne, %3, %c0_i32_1 : i32
    scf.if %4 {
      %c0_13 = arith.constant 0 : index
      %c0_14 = arith.constant 0 : index
      %c0_15 = arith.constant 0 : index
      %17 = vector.load %arg3[%c0_13, %c0_14, %c0_15] : memref<2x8x32xbf16, #tpu.memory_space<vmem>>, vector<2x8x32xbf16>
      %18 = vector.shape_cast %17 : vector<2x8x32xbf16> to vector<16x32xbf16>
      %c0_16 = arith.constant 0 : index
      %c0_17 = arith.constant 0 : index
      %19 = vector.load %arg5[%c0_16, %c0_17] : memref<32x32xbf16, #tpu.memory_space<vmem>>, vector<32x32xbf16>
      %cst_18 = arith.constant dense<0.000000e+00> : vector<16x32xf32>
      %20 = tpu.matmul %18, %19, %cst_18 {dimension_numbers = #tpu.dot_dimension_numbers<[1], [0], [0], [1], [0, 0, 1, 1], [], []>} : vector<16x32xbf16>, vector<32x32xbf16>, vector<16x32xf32> -> vector<16x32xf32>
      %c0_19 = arith.constant 0 : index
      %c0_20 = arith.constant 0 : index
      %21 = vector.load %arg6[%c0_19, %c0_20] : memref<1x32xf32, #tpu.memory_space<vmem>>, vector<1x32xf32>
      %22 = vector.broadcast %21 : vector<1x32xf32> to vector<16x32xf32>
      %23 = arith.addf %20, %22 : vector<16x32xf32>
      %24 = math.tanh %23 : vector<16x32xf32>
      %25 = vector.shape_cast %24 : vector<16x32xf32> to vector<2x8x32xf32>
      %26 = arith.truncf %25 : vector<2x8x32xf32> to vector<2x8x32xbf16>
      %c0_21 = arith.constant 0 : index
      %c0_22 = arith.constant 0 : index
      %c0_23 = arith.constant 0 : index
      %27 = vector.load %arg12[%c0_21, %c0_22, %c0_23] : memref<2x8x32xbf16, #tpu.memory_space<vmem>>, vector<2x8x32xbf16>
      tpu.vector_store %arg12[%c0_21, %c0_22, %c0_23], %26 {strides = array<i32>} : memref<2x8x32xbf16, #tpu.memory_space<vmem>>, vector<2x8x32xbf16>,
      %cst_24 = arith.constant dense<0.000000e+00> : vector<2x32xf32>
      %28 = vector.multi_reduction <add>, %25, %cst_24 [1] : vector<2x8x32xf32> to vector<2x32xf32>
      %cst_25 = arith.constant 1.250000e-01 : f32
      %29 = vector.broadcast %cst_25 : f32 to vector<2x32xf32>
      %30 = arith.mulf %28, %29 : vector<2x32xf32>
      %31 = arith.truncf %30 : vector<2x32xf32> to vector<2x32xbf16>
      %c0_26 = arith.constant 0 : index
      %c0_27 = arith.constant 0 : index
      %32 = vector.load %arg7[%c0_26, %c0_27] : memref<32x32xbf16, #tpu.memory_space<vmem>>, vector<32x32xbf16>
      %cst_28 = arith.constant dense<0.000000e+00> : vector<2x32xf32>
      %33 = tpu.matmul %31, %32, %cst_28 {dimension_numbers = #tpu.dot_dimension_numbers<[1], [0], [0], [1], [0, 0, 1, 1], [], []>} : vector<2x32xbf16>, vector<32x32xbf16>, vector<2x32xf32> -> vector<2x32xf32>
      %c0_29 = arith.constant 0 : index
      %c0_30 = arith.constant 0 : index
      %34 = vector.load %arg13[%c0_29, %c0_30] : memref<2x32xf32, #tpu.memory_space<vmem>>, vector<2x32xf32>
      tpu.vector_store %arg13[%c0_29, %c0_30], %33 {strides = array<i32>} : memref<2x32xf32, #tpu.memory_space<vmem>>, vector<2x32xf32>,
    } else {
    }
    %c0_i32_2 = arith.constant 0 : i32
    %5 = arith.cmpi eq, %arg2, %c0_i32_2 : i32
    %6 = arith.extui %5 : i1 to i32
    %c0_i32_3 = arith.constant 0 : i32
    %7 = arith.cmpi ne, %6, %c0_i32_3 : i32
    scf.if %7 {
      %c0_13 = arith.constant 0 : index
      %c0_14 = arith.constant 0 : index
      %c0_15 = arith.constant 0 : index
      %17 = vector.load %arg4[%c0_13, %c0_14, %c0_15] : memref<2x8x32xbf16, #tpu.memory_space<vmem>>, vector<2x8x32xbf16>
      %18 = vector.shape_cast %17 : vector<2x8x32xbf16> to vector<16x32xbf16>
      %c0_16 = arith.constant 0 : index
      %c0_17 = arith.constant 0 : index
      %19 = vector.load %arg8[%c0_16, %c0_17] : memref<32x32xbf16, #tpu.memory_space<vmem>>, vector<32x32xbf16>
      %cst_18 = arith.constant dense<0.000000e+00> : vector<16x32xf32>
      %20 = tpu.matmul %18, %19, %cst_18 {dimension_numbers = #tpu.dot_dimension_numbers<[1], [0], [0], [1], [0, 0, 1, 1], [], []>} : vector<16x32xbf16>, vector<32x32xbf16>, vector<16x32xf32> -> vector<16x32xf32>
      %21 = vector.shape_cast %20 : vector<16x32xf32> to vector<2x8x32xf32>
      %c0_19 = arith.constant 0 : index
      %c0_20 = arith.constant 0 : index
      %22 = vector.load %arg13[%c0_19, %c0_20] : memref<2x32xf32, #tpu.memory_space<vmem>>, vector<2x32xf32>
      %23 = vector.shape_cast %22 : vector<2x32xf32> to vector<2x1x32xf32>
      %24 = vector.broadcast %23 : vector<2x1x32xf32> to vector<2x8x32xf32>
      %25 = arith.addf %21, %24 : vector<2x8x32xf32>
      %26 = math.tanh %25 : vector<2x8x32xf32>
      %27 = arith.truncf %26 : vector<2x8x32xf32> to vector<2x8x32xbf16>
      %c0_21 = arith.constant 0 : index
      %c0_22 = arith.constant 0 : index
      %c0_23 = arith.constant 0 : index
      %28 = vector.load %arg12[%c0_21, %c0_22, %c0_23] : memref<2x8x32xbf16, #tpu.memory_space<vmem>>, vector<2x8x32xbf16>
      "tpu.trace_start"() <{level = 10 : i32, message = "bth,bsh->bts"}> : () -> ()
      %cst_24 = arith.constant dense<0.000000e+00> : vector<2x8x8xf32>
      %29 = tpu.matmul %27, %28, %cst_24 {dimension_numbers = #tpu.dot_dimension_numbers<[2], [2], [1], [1], [0, 0, 0, 1, 1, 1], [0], [0]>} : vector<2x8x32xbf16>, vector<2x8x32xbf16>, vector<2x8x8xf32> -> vector<2x8x8xf32>
      "tpu.trace_stop"() : () -> ()
      %cst_25 = arith.constant dense<0xFF800000> : vector<2x8xf32>
      %30 = vector.multi_reduction <maximumf>, %29, %cst_25 [2] : vector<2x8x8xf32> to vector<2x8xf32>
      %31 = vector.shape_cast %30 : vector<2x8xf32> to vector<2x8x1xf32>
      %32 = vector.broadcast %31 : vector<2x8x1xf32> to vector<2x8x8xf32>
      %33 = arith.subf %29, %32 : vector<2x8x8xf32>
      %34 = math.exp %33 : vector<2x8x8xf32>
      %cst_26 = arith.constant dense<0.000000e+00> : vector<2x8xf32>
      %35 = vector.multi_reduction <add>, %34, %cst_26 [2] : vector<2x8x8xf32> to vector<2x8xf32>
      %36 = vector.shape_cast %35 : vector<2x8xf32> to vector<2x8x1xf32>
      %37 = tpu.reciprocal %36 {approx = true} : vector<2x8x1xf32> -> vector<2x8x1xf32>
      %38 = vector.broadcast %37 : vector<2x8x1xf32> to vector<2x8x8xf32>
      %39 = arith.mulf %34, %38 : vector<2x8x8xf32>
      %40 = arith.truncf %39 : vector<2x8x8xf32> to vector<2x8x8xbf16>
      "tpu.trace_start"() <{level = 10 : i32, message = "bts,bsh->bth"}> : () -> ()
      %cst_27 = arith.constant dense<0.000000e+00> : vector<2x8x32xf32>
      %41 = tpu.matmul %40, %28, %cst_27 {dimension_numbers = #tpu.dot_dimension_numbers<[2], [1], [1], [2], [0, 0, 0, 1, 1, 2], [0], [0]>} : vector<2x8x8xbf16>, vector<2x8x32xbf16>, vector<2x8x32xf32> -> vector<2x8x32xf32>
      "tpu.trace_stop"() : () -> ()
      %42 = arith.addf %26, %41 : vector<2x8x32xf32>
      %43 = arith.truncf %42 : vector<2x8x32xf32> to vector<2x8x32xbf16>
      %c0_28 = arith.constant 0 : index
      %c0_29 = arith.constant 0 : index
      %c0_30 = arith.constant 0 : index
      %44 = vector.load %arg14[%c0_28, %c0_29, %c0_30] : memref<2x8x32xbf16, #tpu.memory_space<vmem>>, vector<2x8x32xbf16>
      tpu.vector_store %arg14[%c0_28, %c0_29, %c0_30], %43 {strides = array<i32>} : memref<2x8x32xbf16, #tpu.memory_space<vmem>>, vector<2x8x32xbf16>,
    } else {
    }
    %c0 = arith.constant 0 : index
    %c0_4 = arith.constant 0 : index
    %c0_5 = arith.constant 0 : index
    %8 = vector.load %arg14[%c0, %c0_4, %c0_5] : memref<2x8x32xbf16, #tpu.memory_space<vmem>>, vector<2x8x32xbf16>
    %9 = vector.shape_cast %8 : vector<2x8x32xbf16> to vector<16x32xbf16>
    %c0_6 = arith.constant 0 : index
    %c0_7 = arith.constant 0 : index
    %10 = vector.load %arg9[%c0_6, %c0_7] : memref<32x128xbf16, #tpu.memory_space<vmem>>, vector<32x128xbf16>
    %cst = arith.constant dense<0.000000e+00> : vector<16x128xf32>
    %11 = tpu.matmul %9, %10, %cst {dimension_numbers = #tpu.dot_dimension_numbers<[1], [0], [0], [1], [0, 0, 1, 1], [], []>} : vector<16x32xbf16>, vector<32x128xbf16>, vector<16x128xf32> -> vector<16x128xf32>
    %c0_8 = arith.constant 0 : index
    %c0_9 = arith.constant 0 : index
    %12 = vector.load %arg10[%c0_8, %c0_9] : memref<1x128xf32, #tpu.memory_space<vmem>>, vector<1x128xf32>
    %13 = vector.broadcast %12 : vector<1x128xf32> to vector<16x128xf32>
    %14 = arith.addf %11, %13 : vector<16x128xf32>
    %15 = vector.shape_cast %14 : vector<16x128xf32> to vector<2x8x128xf32>
    %c0_10 = arith.constant 0 : index
    %c0_11 = arith.constant 0 : index
    %c0_12 = arith.constant 0 : index
    %16 = vector.load %arg11[%c0_10, %c0_11, %c0_12] : memref<2x8x128xf32, #tpu.memory_space<vmem>>, vector<2x8x128xf32>
    tpu.vector_store %arg11[%c0_10, %c0_11, %c0_12], %15 {strides = array<i32>} : memref<2x8x128xf32, #tpu.memory_space<vmem>>, vector<2x8x128xf32>,
    return
  }
  func.func @transform_0(%arg0: i32, %arg1: i32, %arg2: i32) -> (i32, i32, i32) {
    %c0_i32 = arith.constant 0 : i32
    %c0_i32_0 = arith.constant 0 : i32
    %c0_i32_1 = arith.constant 0 : i32
    return %arg0, %c0_i32, %c0_i32_0 : i32, i32, i32
  }
  func.func @transform_1(%arg0: i32, %arg1: i32, %arg2: i32) -> (i32, i32, i32) {
    %c0_i32 = arith.constant 0 : i32
    %c0_i32_0 = arith.constant 0 : i32
    return %arg0, %arg1, %c0_i32 : i32, i32, i32
  }
  func.func @transform_2(%arg0: i32, %arg1: i32, %arg2: i32) -> (i32, i32) {
    %c0_i32 = arith.constant 0 : i32
    %c0_i32_0 = arith.constant 0 : i32
    %c0_i32_1 = arith.constant 0 : i32
    return %c0_i32, %c0_i32_0 : i32, i32
  }
  func.func @transform_3(%arg0: i32, %arg1: i32, %arg2: i32) -> (i32, i32) {
    %c0_i32 = arith.constant 0 : i32
    %c0_i32_0 = arith.constant 0 : i32
    %c0_i32_1 = arith.constant 0 : i32
    return %c0_i32, %c0_i32_0 : i32, i32
  }
  func.func @transform_4(%arg0: i32, %arg1: i32, %arg2: i32) -> (i32, i32) {
    %c0_i32 = arith.constant 0 : i32
    %c0_i32_0 = arith.constant 0 : i32
    %c0_i32_1 = arith.constant 0 : i32
    return %c0_i32, %c0_i32_0 : i32, i32
  }
  func.func @transform_5(%arg0: i32, %arg1: i32, %arg2: i32) -> (i32, i32) {
    %c0_i32 = arith.constant 0 : i32
    %c0_i32_0 = arith.constant 0 : i32
    %c0_i32_1 = arith.constant 0 : i32
    return %c0_i32, %c0_i32_0 : i32, i32
  }
  func.func @transform_6(%arg0: i32, %arg1: i32, %arg2: i32) -> (i32, i32) {
    %c0_i32 = arith.constant 0 : i32
    %c0_i32_0 = arith.constant 0 : i32
    return %c0_i32, %arg2 : i32, i32
  }
  func.func @transform_7(%arg0: i32, %arg1: i32, %arg2: i32) -> (i32, i32) {
    %c0_i32 = arith.constant 0 : i32
    %c0_i32_0 = arith.constant 0 : i32
    return %c0_i32, %arg2 : i32, i32
  }
  func.func @transform_8(%arg0: i32, %arg1: i32, %arg2: i32) -> (i32, i32, i32) {
    %c0_i32 = arith.constant 0 : i32
    return %arg0, %arg1, %arg2 : i32, i32, i32
  }
}

</mosaic_0001>

<bundles_post_ra>
// kernel: tpu_custom_call.1
= control target key start
LH: loop header
LB: loop body
LE: loop exit
PB: predicated region body
PF: predicated region fallthrough
CT: control target
= control target key end

     0   :  { %s2496_s0 = inlined_call_operand.hbm [shape: bf16[2,8,32], index: 0, kind: input, shape index: {}]   ;;  %s2497_s1 = inlined_call_operand.hbm [shape: bf16[2,16,32], index: 1, kind: input, shape index: {}]   ;;  %s2498_s2 = inlined_call_operand.hbm [shape: bf16[32,32], index: 2, kind: input, shape index: {}]   ;;  %s2499_s3 = inlined_call_operand.hbm [shape: f32[1,32], index: 3, kind: input, shape index: {}]   ;;  %s2500_s4 = inlined_call_operand.hbm [shape: bf16[32,32], index: 4, kind: input, shape index: {}]   ;;  %s2501_s5 = inlined_call_operand.vmem [shape: bf16[32,32], index: 5, kind: input, shape index: {}]   ;;  %s2502_s6 = inlined_call_operand.hbm [shape: bf16[32,256], index: 6, kind: input, shape index: {}]   ;;  %s2503_s7 = inlined_call_operand.vmem [shape: f32[1,256], index: 7, kind: input, shape index: {}]   ;;  %s2504_s8 = inlined_call_operand.hbm [shape: f32[2,16,256], index: 8, kind: output, shape index: {}]  }
   0x1   :  { %2531 = sst [smem:[#allocation32_spill]] %s2496_s0 }
   0x2   :  { %2532 = sst [smem:[#allocation33_spill]] %s2497_s1 }
   0x3   :  { %2533 = sst [smem:[#allocation34_spill]] %s2498_s2 }
   0x4   :  { %2534 = sst [smem:[#allocation35_spill]] %s2499_s3 }
   0x5   :  { %2535 = sst [smem:[#allocation36_spill]] %s2500_s4 }
   0x6   :  { %2536 = sst [smem:[#allocation37_spill]] %s2501_s5 }
   0x7   :  { %2537 = sst [smem:[#allocation38_spill]] %s2502_s6 }
   0x8   :  { %2538 = sst [smem:[#allocation39_spill]] %s2503_s7 }
   0x9   :  { %2539 = sst [smem:[#allocation40_spill]] %s2504_s8 }
   0xa   :  { %13 = vsyncpa [#allocation6], 0 }
   0xb   :  { %14 = vsyncpa [#allocation9], 0 }
   0xc   :  { %16 = vsyncpa [#allocation9 + $0x1], 0 }
   0xd   :  { %17 = vsyncpa [#allocation12], 0 }
   0xe   :  { %18 = vsyncpa [#allocation15], 0 }
   0xf   :  { %20 = vsyncpa [#allocation15 + $0x1], 0 }
  0x10   :  { %21 = vsyncpa [#allocation7], 0 }
  0x11   :  { %23 = vsyncpa [#allocation7 + $0x1], 0  ;;  %s1973_s27 = smov 0   ;;  %s1975_s28 = smov 0  }
  0x12   :  { %s1977_s29 = smov 0   ;;  %s1979_s30 = smov 0  }
  0x13   :  { %s1981_s9 = smov 0   ;;  %s1983_s10 = smov 0  }
  0x14   :  { %s1985_s11 = smov 0   ;;  %s1987_s12 = smov 0  }
  0x15   :  { %s1989_s13 = smov 0   ;;  %s1991_s14 = smov 0  }
  0x16   :  { %s1993_s15 = smov 0   ;;  %s1995_s16 = smov 0  }
  0x17   :  { %s1997_s17 = smov 0   ;;  %s1999_s18 = smov 0  }
  0x18 LB: > { %2540 = sst [smem:[#allocation23_spill]] %s1854_s27  ;;  %s2040_s19 = sadd.s32 4294967295, %s1906_s18   ;;  %s1906_s18 = sphi %s1999_s18, %s29_s18   ;;  %s1902_s17 = sphi %s1997_s17, %s2614_s17   ;;  %s1898_s16 = sphi %s1995_s16, %s2613_s16   ;;  %s1894_s15 = sphi %s1993_s15, %s2612_s15   ;;  %s1890_s14 = sphi %s1991_s14, %s2611_s14   ;;  %s1886_s13 = sphi %s1989_s13, %s2610_s13   ;;  %s1882_s12 = sphi %s1987_s12, %s2609_s12   ;;  %s1878_s11 = sphi %s1985_s11, %s2608_s11   ;;  %s1874_s10 = sphi %s1983_s10, %s2607_s10   ;;  %s1870_s9 = sphi %s1981_s9, %s2606_s9   ;;  %s1866_s30 = sphi %s1979_s30, %s2605_s30   ;;  %s1862_s29 = sphi %s1977_s29, %s2604_s29   ;;  %s1858_s28 = sphi %s1975_s28, %s2603_s28   ;;  %s1854_s27 = sphi %s1973_s27, %s2599_s27  }
  0x19   : > { %2541 = sst [smem:[#allocation24_spill]] %s1858_s28  ;;  %s1237_s20 = sadd.s32 4294967294, %s1906_s18  }
  0x1a   : > { %2542 = sst [smem:[#allocation25_spill]] %s1890_s14  ;;  %p96_p0 = scmp.ne.s32.totalorder %s1882_s12, %s1878_s11 }
  0x1b   : > { %2543 = sst [smem:[#allocation26_spill]] %s1894_s15  ;;  %p2511_p1 = scmp.eq.s32.totalorder %s2040_s19, 0 }
  0x1c   : > { %p206_p2 = scmp.ne.s32.totalorder %s1870_s9, %s1866_s30  ;;  %p259_p3 = scmp.ne.s32.totalorder %s1862_s29, %s1858_s28 }
  0x1d   : > { %p2050_p4 = por %p2511_p1, %p96_p0  ;;  %p260_p5 = scmp.eq.s32.totalorder %s2040_s19, 3 }
  0x1e   : > { %p2057_p6 = por %p206_p2, %p2511_p1  ;;  %p265_p7 = scmp.ne.s32.totalorder %s1858_s28, %s1854_s27 }
  0x1f   : > { %s2544_s21 = scalar_select %p2050_p4, 1, 0 }
  0x20   : > { %s2546_s22 = scalar_select %p2057_p6, 1, 0 }
  0x21   : > { %2545 = sst [smem:[#allocation27_spill]] %s2544_s21  ;;  %p2063_p8 = por %p260_p5, %p259_p3 }
  0x22   : > { %2547 = sst [smem:[#allocation28_spill]] %s2546_s22  ;;  %p266_p9 = scmp.eq.s32.totalorder %s1237_s20, 3 }
  0x23   : > { %s2548_s23 = scalar_select %p2063_p8, 1, 0 }
  0x24   : > { %p1238_p10 = scmp.ge.s32.totalorder %s1906_s18, 1  ;;  %p273_p11 = scmp.lt.s32.totalorder %s1906_s18, 5 }
  0x25   : > { %2549 = sst [smem:[#allocation29_spill]] %s2548_s23  ;;  %p2069_p12 = por %p266_p9, %p265_p7 }
  0x26   : > { %p2073_p13 = pnand %p1238_p10, %p273_p11  ;;  %s1908_s26 = smov [#allocation10]  }
  0x27   : > { %s2550_s24 = scalar_select %p2069_p12, 1, 0 }
  0x28   : > { %s2552_s25 = scalar_select %p2073_p13, 1, 0 }
  0x29   : > { %2551 = sst [smem:[#allocation30_spill]] %s2550_s24  ;;  %p1382_p0 = pneg %p2073_p13 }
  0x2a   : > { %s301_s30 = sshll.u32 %s1908_s26, 4  ;;  %s1909_s20 = smov [#allocation11]   ;;  %s302_s30 = int_to_ptr.vmem [resolvable:$true] %s301_s30 }
  0x2b   : > { %p2081_p2 = pnand %p1382_p0, %p2511_p1  ;;  %s315_s27 = sshll.u32 %s1909_s20, 4  ;;  %s2085_s27 = int_to_ptr.vmem [resolvable:$true] %s315_s27 }
  0x2c   : > { %s2554_s2 = sld [smem:[#allocation34_spill]] }
  0x2d   : > { %p2095_p5 = pneg %p2081_p2 }
  0x32   : > { %s1572_s23 = scalar_lea.hbm %s2554_s2, 256 }
  0x33   : > { %p1573_p3 = scmp.ne.s32.totalorder %s2554_s2, %s1572_s23  ;;  %p1579_p10 = scmp.lt.u32.totalorder %s1572_s23, %s2554_s2 }
  0x35   : > { %p1575_p7 = pnand %p2095_p5, %p1573_p3 }
  0x37   : > { %p1576_p9 = pneg %p1575_p7 }
  0x39   : > { %p1581_p11 = pnand %p1579_p10, %p1576_p9 }
  0x3b   : > { %1584 = shalt.err (!%p1581_p11)
}
  0x3c   : > { %s1585_s8 = scalar_lea.vmem %s302_s30, 256  ;;  %p1593_p8 = scmp.lt.s32.totalorder %s302_s30, %s302_s30 }
  0x3d   : > { %p1586_p0 = scmp.ne.s32.totalorder %s302_s30, %s1585_s8  ;;  %p1594_p6 = scmp.lt.s32.totalorder %s1585_s8, %s1585_s8 }
  0x3f   : > { %p1588_p1 = pnand %p1586_p0, %p2095_p5  ;;  %p1595_p4 = por %p1594_p6, %p1593_p8 }
  0x41   : > { %p1589_p12 = pneg %p1588_p1 }
  0x43   : > { %p1596_p13 = pnand %p1595_p4, %p1589_p12 }
  0x45   : > { %1599 = shalt.err (!%p1596_p13)
}
  0x46   : > { %s2523_s5 = smov 64   ;;  %s2525_s7 = smov 4  }
  0x47   : > { %1388 = dma.hbm_to_vmem [thread:$0]  (!%p2081_p2), %s2554_s2, 256, %s302_s30, [#allocation9], %s2523_s5, %s2523_s5, %s2525_s7  }
  0x48   : > { %s2556_s3 = sld [smem:[#allocation35_spill]] }
  0x4e   : > { %s1600_s14 = scalar_lea.hbm %s2556_s3, 16 }
  0x4f   : > { %p1601_p1 = scmp.ne.s32.totalorder %s2556_s3, %s1600_s14  ;;  %p1607_p8 = scmp.lt.u32.totalorder %s1600_s14, %s2556_s3 }
  0x51   : > { %p1603_p4 = pnand %p1601_p1, %p2095_p5 }
  0x53   : > { %p1604_p6 = pneg %p1603_p4 }
  0x55   : > { %p1609_p12 = pnand %p1607_p8, %p1604_p6 }
  0x57   : > { %1612 = shalt.err (!%p1609_p12)
}
  0x58   : > { %s1613_s30 = scalar_lea.vmem %s2085_s27, 16  ;;  %s1620_s28 = scalar_lea.vmem %s2085_s27, 32 }
  0x59   : > { %p1614_p13 = scmp.ne.s32.totalorder %s2085_s27, %s1613_s30  ;;  %p1621_p9 = scmp.lt.s32.totalorder %s2085_s27, %s2085_s27 }
  0x5a   : > { %p1622_p10 = scmp.lt.s32.totalorder %s1620_s28, %s1613_s30 }
  0x5b   : > { %p1616_p3 = pnand %p1614_p13, %p2095_p5 }
  0x5c   : > { %p1623_p11 = por %p1622_p10, %p1621_p9 }
  0x5d   : > { %p1617_p7 = pneg %p1616_p3 }
  0x5f   : > { %p1624_p0 = pnand %p1623_p11, %p1617_p7 }
  0x61   : > { %1627 = shalt.err (!%p1624_p0)
}
  0x62   : > { %1391 = dma.hbm_to_vmem [thread:$0]  (!%p2081_p2), %s2556_s3, 16, %s2085_s27, [#allocation12]  }
  0x63   : > { %s1912_s22 = smov [#allocation5]   ;;  %s1913_s23 = smov [#allocation13]  }
  0x64   : > { %s288_s15 = sshll.u32 %s1912_s22, 4  ;;  %s325_s24 = sshll.u32 %s1913_s23, 4  ;;  %s289_s15 = int_to_ptr.vmem [resolvable:$true] %s288_s15  ;;  %s326_s24 = int_to_ptr.vmem [resolvable:$true] %s325_s24 }
  0x65   : > { %s2557_s0 = sld [smem:[#allocation32_spill]] }
  0x6b   : > { %s1628_s30 = scalar_lea.hbm %s2557_s0, 128 }
  0x6c   : > { %p1629_p1 = scmp.ne.s32.totalorder %s2557_s0, %s1628_s30  ;;  %p1635_p8 = scmp.lt.u32.totalorder %s1628_s30, %s2557_s0 }
  0x6e   : > { %p1631_p4 = pnand %p1629_p1, %p2095_p5 }
  0x70   : > { %p1632_p6 = pneg %p1631_p4 }
  0x72   : > { %p1637_p12 = pnand %p1635_p8, %p1632_p6 }
  0x74   : > { %1640 = shalt.err (!%p1637_p12)
}
  0x75   : > { %s1641_s27 = scalar_lea.vmem %s289_s15, 128  ;;  %p1649_p9 = scmp.lt.s32.totalorder %s289_s15, %s289_s15 }
  0x76   : > { %p1642_p13 = scmp.ne.s32.totalorder %s289_s15, %s1641_s27  ;;  %p1650_p10 = scmp.lt.s32.totalorder %s1641_s27, %s1641_s27 }
  0x78   : > { %p1644_p3 = pnand %p1642_p13, %p2095_p5  ;;  %p1651_p11 = por %p1650_p10, %p1649_p9 }
  0x7a   : > { %p1645_p7 = pneg %p1644_p3 }
  0x7c   : > { %p1652_p0 = pnand %p1651_p11, %p1645_p7 }
  0x7e   : > { %1655 = shalt.err (!%p1652_p0)
}
  0x7f   : > { %s2558_s5 = smov 4   ;;  %s2559_s21 = smov 64  }
  0x80   : > { %1385 = dma.hbm_to_vmem [thread:$0]  (!%p2081_p2), %s2557_s0, 128, %s289_s15, [#allocation6], %s2559_s21, %s2559_s21, %s2558_s5  }
  0x81   : > { %s2560_s4 = sld [smem:[#allocation36_spill]] }
  0x87   : > { %s1656_s8 = scalar_lea.hbm %s2560_s4, 256 }
  0x88   : > { %p1657_p1 = scmp.ne.s32.totalorder %s2560_s4, %s1656_s8  ;;  %p1663_p8 = scmp.lt.u32.totalorder %s1656_s8, %s2560_s4 }
  0x8a   : > { %p1659_p4 = pnand %p1657_p1, %p2095_p5 }
  0x8c   : > { %p1660_p6 = pneg %p1659_p4 }
  0x8e   : > { %p1665_p12 = pnand %p1663_p8, %p1660_p6 }
  0x90   : > { %1668 = shalt.err (!%p1665_p12)
}
  0x91   : > { %s1669_s7 = scalar_lea.vmem %s326_s24, 256  ;;  %p1677_p9 = scmp.lt.s32.totalorder %s326_s24, %s326_s24 }
  0x92   : > { %p1670_p13 = scmp.ne.s32.totalorder %s326_s24, %s1669_s7  ;;  %p1678_p10 = scmp.lt.s32.totalorder %s1669_s7, %s1669_s7 }
  0x94   : > { %p1672_p3 = pnand %p1670_p13, %p2095_p5  ;;  %p1679_p11 = por %p1678_p10, %p1677_p9 }
  0x96   : > { %p1673_p7 = pneg %p1672_p3 }
  0x98   : > { %p1680_p0 = pnand %p1679_p11, %p1673_p7 }
  0x9a   : > { %1683 = shalt.err (!%p1680_p0)
}
  0x9b   : > { %1394 = dma.hbm_to_vmem [thread:$0]  (!%p2081_p2), %s2560_s4, 256, %s326_s24, [#allocation12], %s2559_s21, %s2559_s21, %s2558_s5  }
  0x9c   : > { %s44_s11 = sadd.s32 1, %s1902_s17  ;;  %p90_p5 = scmp.ne.s32.totalorder %s1886_s13, %s1882_s12 }
  0x9d   : > { %p91_p1 = scmp.eq.s32.totalorder %s1906_s18, 0  ;;  %p2527_p4 = scmp.lt.s32.totalorder %s1906_s18, 4 }
  0x9e   : > { %s342_s23 = sand.u32 1, %s1906_s18   ;;  %s344_s20 = sand.u32 1, %s1886_s13  }
  0x9f   : > { %p92_p6 = por %p91_p1, %p90_p5  ;;  %s1244_s8 = sshll.u32 %s344_s20, 3 }
  0xa0   : > { %s1245_s30 = sshll.u32 %s1902_s17, 6  ;;  %s2561_s1 = sld [smem:[#allocation33_spill]] }
  0xa1   : > { %s346_s24 = scalar_lea.vmem [#allocation8], %s1244_s8  ;;  %p2198_p2 = pnand %p2527_p4, %p92_p6 }
  0xa2   : > { %s355_s7 = sshll.u32 %s346_s24, 4  ;;  %s2204_s22 = scalar_lea.sflag [#allocation9], %s342_s23  ;;  %s2202_s7 = int_to_ptr.vmem [resolvable:$true] %s355_s7 }
  0xa3   : > { %p1686_p12 = pneg %p2198_p2 }
  0xa6   : > { %s2194_s27 = scalar_lea.hbm %s2561_s1, %s1245_s30  ;;  %s1689_s28 = scalar_lea.hbm %s2561_s1, 256 }
  0xa7   : > { %s1684_s20 = scalar_lea.hbm %s2194_s27, 128  ;;  %p1690_p7 = scmp.lt.u32.totalorder %s2194_s27, %s2561_s1 }
  0xa8   : > { %p1685_p8 = scmp.ne.s32.totalorder %s2194_s27, %s1684_s20  ;;  %p1691_p9 = scmp.lt.u32.totalorder %s1689_s28, %s1684_s20 }
  0xa9   : > { %p1693_p11 = scmp.lt.u32.totalorder %s1684_s20, %s2194_s27 }
  0xaa   : > { %p1687_p13 = pnand %p1686_p12, %p1685_p8  ;;  %p1692_p10 = por %p1691_p9, %p1690_p7 }
  0xac   : > { %p1688_p3 = pneg %p1687_p13  ;;  %p1694_p0 = por %p1693_p11, %p1692_p10 }
  0xae   : > { %p1695_p5 = pnand %p1694_p0, %p1688_p3 }
  0xb0   : > { %1698 = shalt.err (!%p1695_p5)
}
  0xb1   : > { %s1699_s23 = scalar_lea.vmem %s2202_s7, 128  ;;  %s1914_s8 = smov [#allocation8]  }
  0xb2   : > { %p1700_p6 = scmp.ne.s32.totalorder %s2202_s7, %s1699_s23  ;;  %s1704_s30 = sshll.u32 %s1914_s8, 4  ;;  %s1705_s30 = int_to_ptr.vmem [resolvable:$false] %s1704_s30 }
  0xb3   : > { %s1706_s14 = scalar_lea.vmem %s1705_s30, 256  ;;  %p1707_p4 = scmp.lt.s32.totalorder %s2202_s7, %s1705_s30 }
  0xb4   : > { %p1702_p8 = pnand %p1700_p6, %p1686_p12  ;;  %p1708_p7 = scmp.lt.s32.totalorder %s1706_s14, %s1699_s23 }
  0xb6   : > { %p1703_p13 = pneg %p1702_p8  ;;  %p1709_p9 = por %p1708_p7, %p1707_p4 }
  0xb8   : > { %p1710_p10 = pnand %p1709_p9, %p1703_p13 }
  0xba   : > { %1713 = shalt.err (!%p1710_p10)
}
  0xbb   : > { %s2528_s20 = smov 128   ;;  %s193_s15 = sadd.s32 1, %s1874_s10 }
  0xbc   : > { %1398 = dma.hbm_to_vmem [thread:$0]  (!%p2198_p2), %s2194_s27, 128, %s2202_s7, %s2204_s22, %s2528_s20, %s2559_s21, %s2558_s5  }
  0xbd   : > { %s41_s28 = sadd.s32 1, %s1898_s16  ;;  %p200_p4 = scmp.ne.s32.totalorder %s1874_s10, %s1870_s9 }
  0xbe   : > { %p42_p12 = scmp.ge.s32.totalorder %s41_s28, 2  ;;  %s249_s24 = sadd.s32 1, %s1862_s29 }
  0xbf   : > { %p2242_p3 = por %p200_p4, %p91_p1  ;;  %s365_s8 = sand.u32 1, %s1874_s10  }
  0xc0   : > { %s2616_s28 = smov (%p42_p12, %s41_s28), 0  ;;  %s2618_s11 = smov (!%p42_p12, %s44_s11), %s1902_s17 }
  0xc1   : > { %2564 = sst [smem:[#allocation31_spill]] %s2616_s28  ;;  %s190_s27 = ssub.s32 %s1898_s16, %s2616_s28 }
  0xc2   : > { %p46_p2 = scmp.ge.s32.totalorder %s2618_s11, 2  ;;  %p191_p11 = scmp.eq.s32.totalorder %s190_s27, 0 }
  0xc3   : > { %s1246_s7 = sshll.u32 %s365_s8, 4  ;;  %s1247_s22 = sshll.u32 %s1898_s16, 6 }
  0xc4   : > { %s2620_s11 = smov (%p46_p2, %s2618_s11), 0  ;;  %s2565_s6 = sld [smem:[#allocation38_spill]] }
  0xc5   : > { %s2258_s30 = scalar_select %p191_p11, %s1874_s10, %s193_s15  }
  0xc6   : > { %s79_s14 = ssub.s32 %s1902_s17, %s2620_s11  ;;  %s2566_s2 = sadd.s32 1, %s1886_s13 }
  0xc7   : > { %p81_p1 = scmp.eq.s32.totalorder %s79_s14, 0  ;;  %s246_s20 = sor.u32 %s190_s27, %s79_s14 }
  0xc8   : > { %p247_p0 = scmp.eq.s32.totalorder %s246_s20, 0  ;;  %s369_s15 = scalar_lea.vmem [#allocation14], %s1246_s7 }
  0xc9   : > { %s2270_s3 = scalar_select %p81_p1, %s1886_s13, %s2566_s2  }
  0xca   : > { %s2265_s1 = scalar_lea.hbm %s2565_s6, %s1247_s22  ;;  %s375_s28 = sshll.u32 %s369_s15, 4  ;;  %s2283_s28 = int_to_ptr.vmem [resolvable:$true] %s375_s28 }
  0xcb   : > { %s2273_s4 = scalar_select %p247_p0, %s1862_s29, %s249_s24  }
  0xcc   : > { %p2567_p5 = scmp.lt.s32.totalorder %s1906_s18, 4  ;;  %s2285_s0 = scalar_lea.sflag [#allocation15], %s365_s8 }
  0xcd   : > { %s1714_s26 = scalar_lea.hbm %s2265_s1, 256  ;;  %s1719_s23 = scalar_lea.hbm %s2565_s6, 512 }
  0xce   : > { %p2279_p6 = pnand %p2567_p5, %p2242_p3  ;;  %p1715_p8 = scmp.ne.s32.totalorder %s2265_s1, %s1714_s26 }
  0xcf   : > { %p1720_p10 = scmp.lt.u32.totalorder %s2265_s1, %s2565_s6  ;;  %p1721_p4 = scmp.lt.u32.totalorder %s1719_s23, %s1714_s26 }
  0xd0   : > { %p1716_p13 = pneg %p2279_p6  ;;  %p1723_p3 = scmp.lt.u32.totalorder %s1714_s26, %s2265_s1 }
  0xd1   : > { %p1722_p12 = por %p1721_p4, %p1720_p10 }
  0xd2   : > { %p1717_p7 = pnand %p1716_p13, %p1715_p8 }
  0xd3   : > { %p1724_p2 = por %p1723_p3, %p1722_p12 }
  0xd4   : > { %p1718_p9 = pneg %p1717_p7 }
  0xd6   : > { %p1725_p11 = pnand %p1724_p2, %p1718_p9 }
  0xd8   : > { %1728 = shalt.err (!%p1725_p11)
}
  0xd9   : > { %s1729_s8 = scalar_lea.vmem %s2283_s28, 256  ;;  %s1916_s22 = smov [#allocation14]  }
  0xda   : > { %p1730_p1 = scmp.ne.s32.totalorder %s2283_s28, %s1729_s8  ;;  %s1734_s14 = sshll.u32 %s1916_s22, 4  ;;  %s1735_s14 = int_to_ptr.vmem [resolvable:$false] %s1734_s14 }
  0xdb   : > { %s1736_s15 = scalar_lea.vmem %s1735_s14, 512  ;;  %p1737_p8 = scmp.lt.s32.totalorder %s2283_s28, %s1735_s14 }
  0xdc   : > { %p1732_p0 = pnand %p1730_p1, %p1716_p13  ;;  %p1738_p7 = scmp.lt.s32.totalorder %s1736_s15, %s1729_s8 }
  0xde   : > { %p1733_p5 = pneg %p1732_p0  ;;  %p1739_p10 = por %p1738_p7, %p1737_p8 }
  0xe0   : > { %p1740_p4 = pnand %p1739_p10, %p1733_p5 }
  0xe2   : > { %1743 = shalt.err (!%p1740_p4)
}
  0xe3   : > { %s2569_s26 = smov 128   ;;  %p2570_p13 = scmp.ne.s32.totalorder %s2552_s25, 0 }
  0xe4   : > { %1401 = dma.hbm_to_vmem [thread:$0]  (!%p2279_p6), %s2265_s1, 256, %s2283_s28, %s2285_s0, %s2569_s26, %s2559_s21, %s2558_s5  }
  0xe5   : > { %393 = sbr.rel (%p2570_p13) target bundleno = 1984 (0x7c0), region = 52  ;;  %p2571_p9 = scmp.eq.s32.totalorder (!%p2570_p13), %s2040_s19, 0 }
  0xec   : > { %1829 = dma.done.wait (%p2571_p9), [#allocation6], 128   ;;  %p2572_p12 = pmov %p2571_p9 }
  0xed   : > { %s2573_s2 = sld [smem:[#allocation27_spill]]  ;;  %s399_s20 = sand.u32 1, %s2040_s19  }
  0xee   : > { %1831 = vsyncadd (%p2572_p12), [#allocation6], 4294967168  ;;  %s401_s24 = sand.u32 1, %s1882_s12   ;;  %s400_s27 = scalar_lea.sflag [#allocation9], %s399_s20 }
  0xef   : > { %s2324_s23 = sshll.u32 %s401_s24, 3 }
  0xf0   : > { %s403_s7 = scalar_lea.vmem [#allocation8], %s2324_s23 }
  0xf3   : > { %p2574_p6 = scmp.ne.s32.totalorder %s2573_s2, 0 }
  0xf5   : > { %1833 = dma.done.wait (%p2574_p6), %s400_s27, 128  }
  0xf6   : > { %1835 = vsyncadd (%p2574_p6), %s400_s27, 4294967168  ;;  %p2575_p3 = pmov %p2571_p9 }
  0xf8   : > { %1837 = dma.done.wait (%p2575_p3), [#allocation9], 256   ;;  %p2576_p2 = pmov %p2575_p3 }
  0xfa   : > { %1839 = vsyncadd (%p2576_p2), [#allocation9], 4294967040  ;;  %p2577_p11 = pmov %p2576_p2 }
  0xfb   : > { %p2578_p1 = pmov %p2576_p2 }
  0xfc   : > { %1841 = dma.done.wait (%p2577_p11), [#allocation12], 272  }
  0xfd   : > { %1843 = vsyncadd (%p2578_p1), [#allocation12], 4294967024  ;;  %s2579_s1 = sld [smem:[#allocation28_spill]]  ;;  %s420_s25 = sand.u32 1, %s1870_s9  }
  0xfe   : > { %s2340_s5 = sshll.u32 %s420_s25, 4  ;;  %s421_s21 = scalar_lea.sflag [#allocation15], %s420_s25 }
  0xff   : > { %s424_s28 = scalar_lea.vmem [#allocation14], %s2340_s5 }
 0x103   : > { %p2580_p0 = scmp.ne.s32.totalorder %s2579_s1, 0 }
 0x105   : > { %1845 = dma.done.wait (%p2580_p0), %s421_s21, 256  }
 0x106   : > { %1847 = vsyncadd (%p2580_p0), %s421_s21, 4294967040  ;;  %s2581_s0 = sld [smem:[#allocation24_spill]]  ;;  %s2582_s8 = sld [smem:[#allocation25_spill]] }
 0x107   : > { %s2583_s22 = sld [smem:[#allocation26_spill]]  ;;  %s2584_s2 = sld [smem:[#allocation39_spill]] }
 0x10c   : > { %s2530_s19 = sand.u32 1, %s2581_s0   ;;  %p467_p5 = scmp.lt.s32.totalorder %s2582_s8, 1 }
 0x10d   : > { %s1255_s14 = sshll.u32 %s2530_s19, 4  ;;  %p472_p8 = scmp.eq.s32.totalorder %s2583_s22, 0 }
 0x10e   : > { %p473_p7 = scmp.eq.s32.totalorder %s2582_s8, 0  ;;  %s2622_s8 = smov (!%p467_p5, %s2582_s8), 1 }
 0x10f   : > { %s469_s20 = scalar_lea.vmem %s2584_s2, %s2622_s8  ;;  %s2360_s24 = scalar_lea.vmem [#allocation16], %s1255_s14 }
 0x110   : > { %p474_p10 = pnand %p473_p7, %p472_p8 }
 0x111   : > { %v1545_v0 = vld [vmem:[#allocation10] sm:$0xff] (!%p474_p10)   ;;  %v1917_v1 = vmov (!%p474_p10), 0.0   ;;  %v1546_v2 = vld [vmem:[#allocation10 + $0x8] sm:$0xff] (!%p474_p10)   ;;  %vm1918_vm0 = vmmov (!%p474_p10), 0   ;;  %vm508_vm1 = vcmask (!%p474_p10), 261120   ;;  %v1548_v4 = vld [vmem:[#allocation13] sm:$0xff] (!%p474_p10)  }
 0x112   : > { %477 = sbr.rel (%p474_p10) target bundleno = 746 (0x2ea), region = 80  ;;  %1304 = vmatprep.subr.bf16.mxu0 (!%p474_p10), %v1917_v1  ;;  %1312 = vmatprep.subr.bf16.mxu1 (!%p474_p10), %v1917_v1  ;;  %v1547_v3 = vld [vmem:[#allocation5] sm:$0xff] (!%p474_p10)   ;;  %v1549_v5 = vld [vmem:[#allocation13 + $0x8] sm:$0xff] (!%p474_p10)   ;;  %v1256_v6 = vld [vmem:[#allocation11] ss:$0 sm:$0xff] (!%p474_p10)  ;;  %vm557_vm2 = vcmask (!%p474_p10), 257024  }
 0x113   : > { %1305 = vmatpush3.bf16.msra.mxu0 (!%p474_p10), %v1545_v0  ;;  %1308 = vmatprep.mubr.msk.bf16.mxu0 (!%p474_p10), %vm1918_vm0, %v1917_v1  ;;  %vm586_vm3 = vcmask (!%p474_p10), 1041409   ;;  %vm644_vm4 = vcmask (!%p474_p10), 254976  }
 0x114   : > { %1306 = vmatprep.subr.bf16.mxu0 (!%p474_p10), %v1917_v1  ;;  %1316 = vmatprep.mubr.msk.bf16.mxu1 (!%p474_p10), %vm1918_vm0, %v1917_v1 }
 0x115   : > { %1313 = vmatpush3.bf16.msra.mxu1 (!%p474_p10), %v1548_v4 }
 0x116   : > { %1314 = vmatprep.subr.bf16.mxu1 (!%p474_p10), %v1917_v1 }
 0x117   : > { %1307 = vmatpush3.bf16.msra.mxu0 (!%p474_p10), %v1546_v2 }
 0x119   : > { %1315 = vmatpush3.bf16.msra.mxu1 %v1549_v5 }
 0x11a   : > { %1309 = vmatmul.mubr.msk.bf16.vlgmr.msra.gmra.mrb[0].mxu0 %vm508_vm1, %v1547_v3 }
 0x1ed   : > { %v546_v7 = vpop.f32.mrb[0].mxu0 }
 0x1ee   : > { %v547_v8 = vadd.f32 %v1256_v6, %v546_v7  ;;  %v1310_v9 = vpop.f32.mrb[1].mxu0 }
 0x1ef   : > { %v549_v10 = vpop.f32.mrb[2].mxu0 }
 0x1f0   : > { %1550 = vtanh.f32 %v547_v8  ;;  %v550_v11 = vadd.f32 %v1256_v6, %v549_v10  ;;  %v1311_v12 = vpop.f32.mrb[3].mxu0 }
 0x1f2   : > { %1552 = vtanh.f32 %v550_v11 }
 0x1fa   : > { %v1551_v13 = vpop.eup %1550 }
 0x1fb   : > { %v555_v14 = vpack.c.bf16 %v1551_v13, %v1551_v13  ;;  %v560_v15 = vsel %vm508_vm1, %v1551_v13, 0.0 }
 0x1fc   : > { %v1553_v16 = vpop.eup %1552  ;;  %v561_v17 = vrot.slane %v560_v15, 4 }
 0x1fd   : > { %558 = vst.msk [vmem:[#allocation2] sm:$0xf] %vm557_vm2, %v555_v14  ;;  %v556_v18 = vpack.c.bf16 %v1553_v16, %v1553_v16  ;;  %v567_v19 = vsel %vm508_vm1, %v1553_v16, 0.0 }
 0x1fe   : > { %v562_v20 = vadd.f32 %v561_v17, %v560_v15  ;;  %v568_v21 = vrot.slane %v567_v19, 4 }
 0x1ff   : > { %559 = vst.msk [vmem:[#allocation2 + $0x4] sm:$0xf] %vm557_vm2, %v556_v18 }
 0x200   : > { %v563_v22 = vrot.slane %v562_v20, 2  ;;  %v569_v23 = vadd.f32 %v568_v21, %v567_v19 }
 0x202   : > { %v564_v24 = vadd.f32 %v563_v22, %v562_v20  ;;  %v570_v25 = vrot.slane %v569_v23, 2 }
 0x204   : > { %v571_v26 = vadd.f32 %v570_v25, %v569_v23  ;;  %v565_v27 = vrot.slane %v564_v24, 1 }
 0x206   : > { %v566_v28 = vadd.f32 %v565_v27, %v564_v24  ;;  %v572_v29 = vrot.slane %v571_v26, 1 }
 0x208   : > { %v573_v30 = vadd.f32 %v572_v29, %v571_v26  ;;  %v574_v31 = vmul.f32 0.125, %v566_v28 }
 0x20a   : > { %v575_v32 = vmul.f32 0.125, %v573_v30  ;;  %v576_v33 = vpack.c.bf16 %v574_v31, %v574_v31 }
 0x20c   : > { %v577_v34 = vpack.c.bf16 %v575_v32, %v575_v32  ;;  %v584_v35 = vunpack.c.l.b16 %v576_v33 }
 0x20e   : > { %v585_v36 = vunpack.c.l.b16 %v577_v34 }
 0x210   : > { %v587_v37 = vsel %vm586_vm3, %v585_v36, %v584_v35 }
 0x211   : > { %v588_v38 = vpack.c.b16 %v587_v37, %v587_v37 }
 0x213   : > { %1317 = vmatmul.mubr.msk.bf16.vlgmr.msra.gmra.mrb[0].mxu1 %vm508_vm1, %v588_v38 }
 0x2e6   : > { %v638_v39 = vpop.f32.mrb[0].mxu1 }
 0x2e7   : > { %645 = vst.msk [vmem:[#allocation3] sm:$0x3] %vm644_vm4, %v638_v39  ;;  %v1318_v40 = vpop.f32.mrb[1].mxu1 }
 0x2e8   : > { %v641_v41 = vpop.f32.mrb[2].mxu1 }
 0x2e9   : > { %v1319_v42 = vpop.f32.mrb[3].mxu1 }
 0x2ea PF: > { %s2585_s27 = sld [smem:[#allocation25_spill]] }
 0x2f0   : > { %p1264_p4 = scmp.ne.s32.totalorder %s2585_s27, 0 }
 0x2f1   : > { %s2586_s21 = sld [smem:[#allocation37_spill]] (!%p1264_p4)  ;;  %v1919_v44 = vmov (!%p1264_p4), 0.0   ;;  %vm1920_vm5 = vmmov (!%p1264_p4), 0   ;;  %v1556_v46 = vld [vmem:[%s403_s7] sm:$0xff] (!%p1264_p4)   ;;  %vm672_vm6 = vcmask (!%p1264_p4), 261120   ;;  %v730_v53 = vlaneseq (!%p1264_p4) }
 0x2f2   : > { %648 = sbr.rel (%p1264_p4) target bundleno = 1743 (0x6cf), region = 84  ;;  %1320 = vmatprep.subr.bf16.mxu0 (!%p1264_p4), %v1919_v44  ;;  %1328 = vmatprep.subr.bf16.mxu1 (!%p1264_p4), %v1919_v44  ;;  %v757_v47 = vld [vmem:[#allocation2] sm:$0xf] (!%p1264_p4)  ;;  %v2379_v48 = vld [vmem:[#allocation2 + $0x4] sm:$0xf] (!%p1264_p4)  ;;  %vm879_vm7 = vcmask (!%p1264_p4), 1043456  }
 0x2f3   : > { %1324 = vmatprep.mubr.msk.bf16.mxu0 (!%p1264_p4), %vm1920_vm5, %v1919_v44  ;;  %1330 = vmatprep.mubr.msk.bf16.mxu1 (!%p1264_p4), %vm1920_vm5, %v1919_v44  ;;  %v763_v49 = vsel (!%p1264_p4), %vm672_vm6, %v757_v47, 0  ;;  %v809_v50 = vsel (!%p1264_p4), %vm672_vm6, %v2379_v48, 0  ;;  %v1921_v51 = vmov (!%p1264_p4), 1966171168   ;;  %v731_v55 = vshrl.u32 (!%p1264_p4), %v730_v53, 7 }
 0x2f4   : > { %1329 = vmatpush3.bf16.xpose.msra.mxu1 (!%p1264_p4), %v763_v49  ;;  %v728_v52 = vunpack.c.l.s4 (!%p1264_p4), %v1921_v51  ;;  %v1269_v56 = vld.sshfl [vmem:[#allocation3] sm:$0x11 pattern:$0x75316420] (!%p1264_p4)  ;;  %v880_v7 = vsel (!%p1264_p4), %vm879_vm7, %v757_v47, 0  ;;  %vm851_vm8 = vcmask (!%p1264_p4), 64512  }
 0x2f5   : > { %1340 = vmatprep.subr.bf16.mxu1 (!%p1264_p4), %v1919_v44  ;;  %v726_v58 = vcombine.high (!%p1264_p4), %v1269_v56, %v1269_v56  ;;  %v743_v60 = vsub.s32 (!%p1264_p4), 0, %v731_v55  ;;  %v925_v31 = vsel (!%p1264_p4), %vm879_vm7, %v2379_v48, 0  ;;  %vm971_vm9 = vcmask (!%p1264_p4), 257024  }
 0x2f6   : > { %v729_v54 = vunpack.c.0.s8 (!%p1264_p4), %v728_v52 }
 0x2f7   : > { %v1554_v43 = vld [vmem:[%s2586_s21] sm:$0xff] (!%p1264_p4)   ;;  %v1555_v45 = vld [vmem:[%s2586_s21 + $0x8] sm:$0xff] (!%p1264_p4)  }
 0x2f8   : > { %1321 = vmatpush3.bf16.msra.mxu0 (!%p1264_p4), %v1554_v43  ;;  %v732_v57 = vsub.s32 (!%p1264_p4), %v729_v54, %v731_v55 }
 0x2f9   : > { %1322 = vmatprep.subr.bf16.mxu0 %v1919_v44 }
 0x2fa   : > { %v733_v59 = vrot.slane %v1269_v56, %v732_v57  ;;  %v740_v61 = vrot.slane %v726_v58, %v732_v57 }
 0x2fc   : > { %1323 = vmatpush3.bf16.msra.mxu0 %v1555_v45  ;;  %v744_v62 = vrot.slane %v733_v59, %v743_v60  ;;  %v748_v63 = vrot.slane %v740_v61, %v743_v60 }
 0x2fd   : > { %1334 = vmatprep.subr.bf16.mxu0 %v1919_v44 }
 0x2ff   : > { %1325 = vmatmul.mubr.msk.bf16.vlgmr.msra.gmra.mrb[0].mxu0 %vm672_vm6, %v1556_v46 }
 0x300   : > { %1336 = vmatprep.mubr.msk.bf16.mxu0 %vm1920_vm5, %v1919_v44 }
 0x305   : > { %1335 = vmatpush3.bf16.xpose.msra.mxu0 %v809_v50 }
 0x306   : > { %1346 = vmatprep.subr.bf16.mxu0 %v1919_v44 }
 0x3d2   : > { %v710_v0 = vpop.f32.mrb[0].mxu0 }
 0x3d3   : > { %v751_v1 = vadd.f32 %v744_v62, %v710_v0  ;;  %v1326_v2 = vpop.f32.mrb[1].mxu0 }
 0x3d4   : > { %v713_v3 = vpop.f32.mrb[2].mxu0 }
 0x3d5   : > { %1557 = vtanh.f32 %v751_v1  ;;  %v752_v4 = vadd.f32 %v748_v63, %v713_v3  ;;  %v1327_v5 = vpop.f32.mrb[3].mxu0 }
 0x3d7   : > { %1559 = vtanh.f32 %v752_v4 }
 0x3df   : > { %v1558_v6 = vpop.eup %1557 }
 0x3e0   : > { %v755_v8 = vpack.c.bf16 %v1558_v6, %v1558_v6 }
 0x3e1   : > { %v1560_v9 = vpop.eup %1559 }
 0x3e2   : > { %1331 = vmatmul.mubr.msk.bf16.vlgmr.msra.gmra.mrb[0].mxu1 %vm672_vm6, %v755_v8  ;;  %v756_v10 = vpack.c.bf16 %v1560_v9, %v1560_v9 }
 0x3e3   : > { %1341 = vmatpush3.bf16.msra.mxu1 %v880_v7  ;;  %1342 = vmatprep.mubr.msk.bf16.mxu1 %vm1920_vm5, %v1919_v44 }
 0x3e4   : > { %1337 = vmatmul.mubr.msk.bf16.vlgmr.msra.gmra.mrb[4].mxu0 %vm672_vm6, %v756_v10 }
 0x3e5   : > { %1348 = vmatprep.mubr.msk.bf16.mxu0 %vm1920_vm5, %v1919_v44  ;;  %1347 = vmatpush3.bf16.msra.mxu0 %v925_v31 }
 0x4b5   : > { %v799_v11 = vpop.f32.mrb[0].mxu1 }
 0x4b6   : > { %v1332_v12 = vpop.f32.mrb[1].mxu1  ;;  %v852_v13 = vsel %vm851_vm8, %v799_v11, -inf }
 0x4b7   : > { %853 = vmax.xlane.f32.xlu0 %v852_v13  ;;  %v802_v14 = vpop.f32.mrb[2].mxu1  ;;  %v845_v15 = vpop.f32.mrb[4].mxu0 }
 0x4b8   : > { %v1333_v16 = vpop.f32.mrb[3].mxu1  ;;  %v1338_v17 = vpop.f32.mrb[5].mxu0  ;;  %v855_v20 = vsel %vm851_vm8, %v845_v15, -inf }
 0x4b9   : > { %v848_v18 = vpop.f32.mrb[6].mxu0 }
 0x4ba   : > { %v1339_v19 = vpop.f32.mrb[7].mxu0 }
 0x4bb   : > { %856 = vmax.xlane.f32.xlu0 %v855_v20 }
 0x544   : > { %v854_v21 = vpop.xlane.xlu0 %853 }
 0x545   : > { %v858_v22 = vsub.f32 %v799_v11, %v854_v21 }
 0x547   : > { %v860_v23 = vmul.f32 1.442695, %v858_v22 }
 0x548   : > { %v857_v24 = vpop.xlane.xlu0 %856 }
 0x549   : > { %1561 = vpow2.f32 %v860_v23  ;;  %v859_v25 = vsub.f32 %v845_v15, %v857_v24 }
 0x54b   : > { %v862_v26 = vmul.f32 1.442695, %v859_v25 }
 0x54d   : > { %1563 = vpow2.f32 %v862_v26 }
 0x553   : > { %v1562_v27 = vpop.eup %1561 }
 0x554   : > { %v864_v28 = vsel %vm851_vm8, %v1562_v27, 0.0 }
 0x555   : > { %865 = vadd.xlane.f32.xlu1 %v864_v28 }
 0x557   : > { %v1564_v29 = vpop.eup %1563 }
 0x558   : > { %v867_v30 = vsel %vm851_vm8, %v1564_v29, 0.0 }
 0x559   : > { %868 = vadd.xlane.f32.xlu1 %v867_v30 }
 0x5e2   : > { %v866_v32 = vpop.xlane.xlu1 %865 }
 0x5e3   : > { %1565 = vrcp.f32 %v866_v32 }
 0x5e6   : > { %v869_v33 = vpop.xlane.xlu1 %868 }
 0x5e7   : > { %1567 = vrcp.f32 %v869_v33 }
 0x5ed   : > { %v1566_v34 = vpop.eup %1565 }
 0x5ee   : > { %v872_v35 = vmul.f32 %v1566_v34, %v1562_v27 }
 0x5f0   : > { %v874_v36 = vpack.c.bf16 %v872_v35, %v872_v35 }
 0x5f1   : > { %v1568_v37 = vpop.eup %1567 }
 0x5f2   : > { %v873_v38 = vmul.f32 %v1568_v37, %v1564_v29  ;;  %1343 = vmatmul.mubr.msk.bf16.vlgmr.msra.gmra.mrb[4].mxu1 %vm851_vm8, %v874_v36 }
 0x5f4   : > { %v875_v39 = vpack.c.bf16 %v873_v38, %v873_v38 }
 0x5f6   : > { %1349 = vmatmul.mubr.msk.bf16.vlgmr.msra.gmra.mrb[8].mxu0 %vm851_vm8, %v875_v39 }
 0x6c5   : > { %v916_v40 = vpop.f32.mrb[4].mxu1 }
 0x6c6   : > { %v967_v41 = vadd.f32 %v1558_v6, %v916_v40  ;;  %v1344_v42 = vpop.f32.mrb[5].mxu1 }
 0x6c7   : > { %v919_v43 = vpop.f32.mrb[6].mxu1 }
 0x6c8   : > { %v969_v44 = vpack.c.bf16 %v967_v41, %v967_v41  ;;  %v1345_v45 = vpop.f32.mrb[7].mxu1 }
 0x6c9   : > { %v961_v46 = vpop.f32.mrb[8].mxu0 }
 0x6ca   : > { %972 = vst.msk [vmem:[#allocation4] sm:$0xf] %vm971_vm9, %v969_v44  ;;  %v968_v47 = vadd.f32 %v1560_v9, %v961_v46  ;;  %v1350_v48 = vpop.f32.mrb[9].mxu0 }
 0x6cb   : > { %v964_v49 = vpop.f32.mrb[10].mxu0 }
 0x6cc   : > { %v970_v50 = vpack.c.bf16 %v968_v47, %v968_v47  ;;  %v1351_v51 = vpop.f32.mrb[11].mxu0 }
 0x6ce   : > { %973 = vst.msk [vmem:[#allocation4 + $0x4] sm:$0xf] %vm971_vm9, %v970_v50 }
 0x6cf PF: > { %s2587_s23 = sld [smem:[#allocation26_spill]]  ;;  %s2588_s7 = sld [smem:[#allocation25_spill]]  ;;  %v1569_v52 = vld [vmem:[%s424_s28] sm:$0xff]   ;;  %v1922_v53 = vmov 0.0   ;;  %v1570_v54 = vld [vmem:[%s424_s28 + $0x8] sm:$0xff]   ;;  %vm1923_vm10 = vmmov 0  }
 0x6d0   : > { %1352 = vmatprep.subr.bf16.mxu0 %v1922_v53  ;;  %1356 = vmatprep.mubr.msk.bf16.mxu0 %vm1923_vm10, %v1922_v53  ;;  %vm1004_vm11 = vcmask 261120   ;;  %s2589_s14 = sld [smem:[#allocation24_spill]]  ;;  %v1274_v56 = vld [vmem:[%s469_s20] ss:$0 sm:$0xff]  ;;  %s2591_s25 = sld [smem:[#allocation29_spill]] }
 0x6d1   : > { %1353 = vmatpush3.bf16.msra.mxu0 %v1569_v52  ;;  %s1069_s28 = sshll.u32 %s2360_s24, 4  ;;  %s2592_s19 = sld [smem:[#allocation40_spill]]  ;;  %s2414_s28 = int_to_ptr.vmem [resolvable:$true] %s1069_s28 }
 0x6d2   : > { %1354 = vmatprep.subr.bf16.mxu0 %v1922_v53 }
 0x6d5   : > { %v1571_v55 = vld [vmem:[#allocation4] sm:$0xff]   ;;  %1355 = vmatpush3.bf16.msra.mxu0 %v1570_v54  ;;  %s1280_s15 = sshll.u32 %s2587_s23, 1  ;;  %s1744_s23 = scalar_lea.vmem %s2414_s28, 256 }
 0x6d6   : > { %s1064_s26 = sadd.s32 %s2588_s7, %s1280_s15  ;;  %s2593_s8 = sand.u32 1, %s2589_s14  }
 0x6d7   : > { %s1281_s5 = sshll.u32 %s1064_s26, 7  ;;  %s2420_s20 = scalar_lea.sflag [#allocation7], %s2593_s8 }
 0x6d8   : > { %1357 = vmatmul.mubr.msk.bf16.vlgmr.msra.gmra.mrb[0].mxu0 %vm1004_vm11, %v1571_v55  ;;  %s2412_s6 = scalar_lea.hbm %s2592_s19, %s1281_s5  ;;  %p1745_p13 = scmp.ne.s32.totalorder %s2414_s28, %s1744_s23 }
 0x6d9   : > { %p2594_p9 = scmp.ne.s32.totalorder %s2591_s25, 0  ;;  %s1924_s7 = smov [#allocation16]  }
 0x6da   : > { %s1748_s15 = sshll.u32 %s1924_s7, 4  ;;  %s1749_s15 = int_to_ptr.vmem [resolvable:$false] %s1748_s15 }
 0x6db   : > { %p1746_p12 = pnand %p1745_p13, %p2594_p9  ;;  %s1750_s26 = scalar_lea.vmem %s1749_s15, 512 }
 0x6dc   : > { %p1751_p3 = scmp.lt.s32.totalorder %s2414_s28, %s1749_s15  ;;  %p1752_p2 = scmp.lt.s32.totalorder %s1750_s26, %s1744_s23 }
 0x6dd   : > { %p1747_p6 = pneg %p1746_p12 }
 0x6de   : > { %p1753_p11 = por %p1752_p2, %p1751_p3 }
 0x6e0   : > { %p1754_p1 = pnand %p1753_p11, %p1747_p6 }
 0x7ab   : > { %v1042_v57 = vpop.f32.mrb[0].mxu0 }
 0x7ac   : > { %v1043_v58 = vadd.f32 %v1274_v56, %v1042_v57  ;;  %v1358_v59 = vpop.f32.mrb[1].mxu0 }
 0x7ad   : > { %v1045_v60 = vpop.f32.mrb[2].mxu0 }
 0x7ae   : > { %1049 = vst [vmem:[%s2360_s24] sm:$0xff] %v1043_v58  ;;  %v1046_v61 = vadd.f32 %v1274_v56, %v1045_v60  ;;  %v1359_v62 = vpop.f32.mrb[3].mxu0 }
 0x7b0   : > { %1050 = vst [vmem:[%s2360_s24 + $0x8] sm:$0xff] %v1046_v61 }
 0x7b1   : > { %1757 = shalt.err (!%p1754_p1)
}
 0x7b2   : > { %s1758_s24 = scalar_lea.hbm %s2412_s6, 256  ;;  %s1762_s27 = scalar_lea.hbm %s2592_s19, 1024 }
 0x7b3   : > { %p1759_p0 = scmp.ne.s32.totalorder %s2412_s6, %s1758_s24  ;;  %p1763_p7 = scmp.lt.u32.totalorder %s2412_s6, %s2592_s19 }
 0x7b4   : > { %p1764_p10 = scmp.lt.u32.totalorder %s1762_s27, %s1758_s24  ;;  %p1766_p13 = scmp.lt.u32.totalorder %s1758_s24, %s2412_s6 }
 0x7b5   : > { %p1760_p5 = pnand %p1759_p0, %p2594_p9 }
 0x7b6   : > { %p1765_p4 = por %p1764_p10, %p1763_p7 }
 0x7b7   : > { %p1761_p8 = pneg %p1760_p5 }
 0x7b8   : > { %p1767_p12 = por %p1766_p13, %p1765_p4 }
 0x7ba   : > { %p1768_p6 = pnand %p1767_p12, %p1761_p8 }
 0x7bc   : > { %1771 = shalt.err (!%p1768_p6)
}
 0x7bd   : > { %s1925_s0 = smov 128   ;;  %s1926_s22 = smov 512  }
 0x7be   : > { %s1927_s8 = smov 8  }
 0x7bf   : > { %1380 = dma.vmem_to_hbm [thread:$0]  (%p2594_p9), %s2414_s28, 256, %s2412_s6, %s2420_s20, %s1925_s0, %s1926_s22, %s1927_s8  }
 0x7c0 PF: > { %s2595_s23 = sld [smem:[#allocation23_spill]]  ;;  %s2596_s7 = sld [smem:[#allocation30_spill]] }
 0x7c1   : > { %p1415_p3 = scmp.ge.s32.totalorder %s1906_s18, 2 }
 0x7c6   : > { %s1084_s15 = sand.u32 1, %s2595_s23   ;;  %p2597_p2 = scmp.ne.s32.totalorder %s2596_s7, 0 }
 0x7c7   : > { %s1085_s26 = scalar_lea.sflag [#allocation7], %s1084_s15 }
 0x7c8   : > { %p1403_p11 = pnand %p1415_p3, %p2597_p2 }
 0x7ca   : > { %1849 = dma.done.wait (!%p1403_p11), %s1085_s26, 256  }
 0x7cb   : > { %1851 = vsyncadd (!%p1403_p11), %s1085_s26, 4294967040  ;;  %s29_s18 = sadd.s32 1, %s1906_s18   ;;  %s2599_s27 = sld [smem:[#allocation24_spill]] }
 0x7cc   : > { %p2449_p1 = scmp.ge.s32.totalorder %s29_s18, 6   ;;  %s2600_s6 = smov %s2258_s30 }
 0x7cd   : > { %s2601_s25 = sld [smem:[#allocation31_spill]]  ;;  %s2602_s20 = smov %s2620_s11 }
 0x7ce   : > { %s2603_s28 = smov %s1862_s29  ;;  %s2604_s29 = smov %s2273_s4 }
 0x7cf   : > { %s2605_s30 = smov %s1870_s9  ;;  %s2606_s9 = smov %s1874_s10 }
 0x7d0   : > { %s2607_s10 = smov %s2600_s6  ;;  %s2608_s11 = smov %s1882_s12 }
 0x7d1   : > { %s2609_s12 = smov %s1886_s13  ;;  %s2610_s13 = smov %s2270_s3 }
 0x7d2   : > { %s2611_s14 = smov %s1898_s16  ;;  %s2612_s15 = smov %s1902_s17 }
 0x7d3   : > { %s2613_s16 = smov %s2601_s25  ;;  %s2614_s17 = smov %s2602_s20 }
 0x7d4   :  { %28 = sbr.rel (!%p2449_p1) target bundleno = 24 (0x18), region = 139 }
 0x7db   :  { %1090 = vsyncpa [#allocation6], 1 }
 0x7dc   :  { %1092 = vsyncpa [#allocation6 + $0x1], 1 }
 0x7dd   :  { %1093 = vsyncpa [#allocation9], 1 }
 0x7de   :  { %1095 = vsyncpa [#allocation9 + $0x1], 1 }
 0x7df   :  { %1096 = vsyncpa [#allocation12], 1 }
 0x7e0   :  { %1097 = vsyncpa [#allocation15], 1 }
 0x7e1   :  { %1099 = vsyncpa [#allocation15 + $0x1], 1 }
 0x7e2   :  { %1100 = vsyncpa [#allocation7], 1 }
 0x7e3   :  { %1102 = vsyncpa [#allocation7 + $0x1], 1 }

</bundles_post_ra>
